<compile_context>
chip_gen: v7x
topology: tpu7x:2x2x1
jax: 0.10.0
libtpu: 0.0.40
codegen_flags: <defaults>
</compile_context>

<pallas_src>
import jax
import jax.numpy as jnp
from jax.experimental import pallas as pl
from jax.experimental.pallas import tpu as pltpu

BN_EPS = 1e-5


# ----------------------------------------------------------------------------
# In-kernel helpers
# ----------------------------------------------------------------------------
def _bn_per_view(y, n_views, batch, gamma=None, beta=None, relu=False):
    """Train-mode BatchNorm1d with per-view batch statistics.

    y: (n_views*batch, D) f32, rows are view-major.  Stats are computed over
    each view's `batch` rows only, matching separate encoder(im_aug1) /
    encoder(im_aug2) calls in the PyTorch reference.  Two-pass variance
    (mean, then E[(y-mean)^2]) for numerical robustness.
    """
    d = y.shape[-1]
    yv = y.reshape(n_views, batch, d)                     # layout-preserving split
    mean = jnp.mean(yv, axis=1, keepdims=True)
    cen = yv - mean
    var = jnp.mean(cen * cen, axis=1, keepdims=True)
    out = (cen * jax.lax.rsqrt(var + BN_EPS)).reshape(n_views * batch, d)
    if gamma is not None:
        out = out * gamma + beta
    if relu:
        out = jnp.maximum(out, 0.0)
    return out


# ----------------------------------------------------------------------------
# Fused SimSiam kernel: GAP + projector (l1, l3) + predictor (l1, l2)
# Grid axis j = Dproj output tile ("arbitrary": scratch carry + K-accumulation)
# ----------------------------------------------------------------------------
def _simsiam_kernel(x_ref, w1_ref, p1_ref, w3_ref, wp1_ref, pp1_ref,
                    wp2_ref, pp2_ref, z_ref, p_ref, h1_ref, acc_ref):
    j = pl.program_id(0)
    nj = pl.num_programs(0)
    n_views, batch = z_ref.shape[0], z_ref.shape[1]

    @pl.when(j == 0)
    def _():
        # Backbone tail: global average pool (1/HW pre-folded into W1), then
        # projector layer1 (Linear + BN + ReLU).  Computed once, kept in VMEM
        # scratch (bf16, matmul-ready) for all Dout tiles.
        feat = jnp.sum(x_ref[...].astype(jnp.float32), axis=1)       # (2B, C)
        h = jnp.dot(feat.astype(w1_ref.dtype), w1_ref[...],
                    preferred_element_type=jnp.float32)
        h = _bn_per_view(h, n_views, batch,
                         gamma=p1_ref[0:1, :], beta=p1_ref[1:2, :], relu=True)
        h1_ref[...] = h.astype(h1_ref.dtype)
        acc_ref[...] = jnp.zeros_like(acc_ref)

    # Projector layer3, Dout tile j: Linear + BN(affine=False) -> z tile.
    zj = jnp.dot(h1_ref[...], w3_ref[...], preferred_element_type=jnp.float32)
    zj = _bn_per_view(zj, n_views, batch)
    z_ref[...] = zj.reshape(n_views, batch, -1).astype(z_ref.dtype)

    # Predictor layer1 Linear: accumulate partial products over the z K-tiles.
    acc_ref[...] += jnp.dot(zj.astype(wp1_ref.dtype), wp1_ref[...],
                            preferred_element_type=jnp.float32)

    @pl.when(j == nj - 1)
    def _():
        # Predictor layer1 BN + ReLU, then layer2 Linear (+bias, no BN).
        h2 = _bn_per_view(acc_ref[...], n_views, batch,
                          gamma=pp1_ref[0:1, :], beta=pp1_ref[1:2, :], relu=True)
        p = jnp.dot(h2.astype(wp2_ref.dtype), wp2_ref[...],
                    preferred_element_type=jnp.float32)
        p = p + pp2_ref[0:1, :]
        p_ref[...] = p.reshape(n_views, batch, -1).astype(p_ref.dtype)


# ----------------------------------------------------------------------------
# pallas_call wrapper
# ----------------------------------------------------------------------------
def _dout_tile(dproj):
    # (Din, 512) weight tiles at realistic dims (proj_dim=2048); fall back to
    # 128 at small test dims so the tiled/accumulating path is still exercised.
    if dproj > 512 and dproj % 512 == 0:
        return 512
    if dproj % 128 == 0:
        return 128
    return dproj


def simsiam_fused(params, x_flat, n_views, batch):
    """x_flat: (n_views*batch, HW, C) bf16 (view-major rows) -> (z, p)."""
    vb, hw, c = x_flat.shape
    dproj = params["proj_l1_w"].shape[1]
    dhid = params["pred_l1_w"].shape[1]
    tj = _dout_tile(dproj)
    nj = dproj // tj

    return pl.pallas_call(
        _simsiam_kernel,
        out_shape=(jax.ShapeDtypeStruct((n_views, batch, dproj), jnp.float32),
                   jax.ShapeDtypeStruct((n_views, batch, dproj), jnp.float32)),
        grid=(nj,),
        in_specs=[
            pl.BlockSpec((vb, hw, c), lambda j: (0, 0, 0)),      # features (bf16)
            pl.BlockSpec((c, dproj), lambda j: (0, 0)),          # proj l1 W
            pl.BlockSpec((8, dproj), lambda j: (0, 0)),          # proj l1 gamma/beta
            pl.BlockSpec((dproj, tj), lambda j: (0, j)),         # proj l3 W (Dout tiles)
            pl.BlockSpec((tj, dhid), lambda j: (j, 0)),          # pred l1 W (K tiles)
            pl.BlockSpec((8, dhid), lambda j: (0, 0)),           # pred l1 gamma/beta
            pl.BlockSpec((dhid, dproj), lambda j: (0, 0)),       # pred l2 W
            pl.BlockSpec((8, dproj), lambda j: (0, 0)),          # pred l2 bias
        ],
        out_specs=(
            pl.BlockSpec((n_views, batch, tj), lambda j: (0, 0, j)),     # z tiles
            pl.BlockSpec((n_views, batch, dproj), lambda j: (0, 0, 0)),  # p (last step)
        ),
        scratch_shapes=[
            pltpu.VMEM((vb, dproj), jnp.bfloat16),   # h1 = proj layer1 output
            pltpu.VMEM((vb, dhid), jnp.float32),     # pred layer1 accumulator
        ],
        compiler_params=pltpu.CompilerParams(
            dimension_semantics=("arbitrary",),
            vmem_limit_bytes=48 * 1024 * 1024),
    )(x_flat, params["proj_l1_w"], params["proj_l1_pack"],
      params["proj_l3_w"], params["pred_l1_w"], params["pred_l1_pack"],
      params["pred_l2_w"], params["pred_l2_pack"])


# ----------------------------------------------------------------------------
# Parameter construction (deterministic, PyTorch-like shapes/init)
# ----------------------------------------------------------------------------
def _pack_rows(dout, *rows):
    """Pack up to a few per-feature vectors into one (8, Dout) f32 slab."""
    pack = jnp.zeros((8, dout), jnp.float32)
    for i, r in enumerate(rows):
        pack = pack.at[i].set(r)
    return pack


def make_simsiam_params(key, feat_dim, proj_dim, gap_hw):
    """feat_dim: backbone output dim (512 for resnet18); proj_dim: 2048 in paper.

    gap_hw: spatial size of the backbone's final feature map; its 1/HW average
    factor is folded into proj layer1's weight so the kernel uses a plain sum.
    """
    hidden_pred = proj_dim // 4
    ks = jax.random.split(key, 6)

    def linear_w(k, din, dout):
        bound = 1.0 / jnp.sqrt(din)
        return jax.random.uniform(k, (din, dout), jnp.float32, -bound, bound)

    def bn_affine(k, dim):
        kg, kb = jax.random.split(k)
        gamma = 1.0 + 0.1 * jax.random.normal(kg, (dim,), jnp.float32)
        beta = 0.1 * jax.random.normal(kb, (dim,), jnp.float32)
        return gamma, beta

    params = {}

    # projector layer1: Linear(+BN+ReLU).  Bias dropped (exactly cancelled by
    # the BN mean-centering that follows); GAP 1/HW folded into the weight.
    w = linear_w(ks[0], feat_dim, proj_dim) * (1.0 / gap_hw)
    g, b = bn_affine(ks[1], proj_dim)
    params["proj_l1_w"] = w.astype(jnp.bfloat16)
    params["proj_l1_pack"] = _pack_rows(proj_dim, g, b)

    # projector layer3: Linear(+BN affine=False).  Bias dropped; BN has no params.
    params["proj_l3_w"] = linear_w(ks[2], proj_dim, proj_dim).astype(jnp.bfloat16)

    # predictor layer1: Linear(+BN+ReLU).  Bias dropped.
    w = linear_w(ks[3], proj_dim, hidden_pred)
    g, b = bn_affine(ks[4], hidden_pred)
    params["pred_l1_w"] = w.astype(jnp.bfloat16)
    params["pred_l1_pack"] = _pack_rows(hidden_pred, g, b)

    # predictor layer2: plain Linear, bias kept.
    kw, kb = jax.random.split(ks[5])
    bound = 1.0 / jnp.sqrt(hidden_pred)
    params["pred_l2_w"] = jax.random.uniform(
        kw, (hidden_pred, proj_dim), jnp.float32, -bound, bound).astype(jnp.bfloat16)
    bias = jax.random.uniform(kb, (proj_dim,), jnp.float32, -bound, bound)
    params["pred_l2_pack"] = _pack_rows(proj_dim, bias)

    return params


# ----------------------------------------------------------------------------
# Forward pass (matches SimSiam.forward semantics)
# ----------------------------------------------------------------------------
def _to_lane_major(x):
    """NCHW -> (B, H*W, C): channels on lanes for the fused in-kernel GAP."""
    b, c, h, w = x.shape
    return x.reshape(b, c, h * w).transpose(0, 2, 1)


@jax.jit
def simsiam_forward(params, im_aug1, im_aug2):
    b = im_aug1.shape[0]
    # View-major row stacking (rows 0..B-1 = view1, B..2B-1 = view2), bf16 to
    # halve the dominant feature-map DMA (GAP accumulates in f32 in-kernel).
    x_flat = jnp.concatenate(
        [_to_lane_major(im_aug1), _to_lane_major(im_aug2)], axis=0
    ).astype(jnp.bfloat16)

    z, p = simsiam_fused(params, x_flat, n_views=2, batch=b)
    return {"z1": z[0], "z2": z[1], "p1": p[0], "p2": p[1]}


# ----------------------------------------------------------------------------
if __name__ == "__main__":
    key = jax.random.PRNGKey(0)
    k_params, k_im1, k_im2 = jax.random.split(key, 3)

    # Small shapes: batch=8, backbone feature channels=128, spatial 4x4,
    # projection dim 256 (stands for 2048), predictor hidden = 256 // 4 = 64.
    B, C, H, W = 8, 128, 4, 4
    PROJ_DIM = 256

    params = make_simsiam_params(k_params, feat_dim=C, proj_dim=PROJ_DIM,
                                 gap_hw=H * W)
    im_aug1 = jax.random.normal(k_im1, (B, C, H, W), jnp.float32)
    im_aug2 = jax.random.normal(k_im2, (B, C, H, W), jnp.float32)

    out = simsiam_forward(params, im_aug1, im_aug2)
    jax.block_until_ready(out)

    assert out["z1"].shape == (B, PROJ_DIM)
    assert out["z2"].shape == (B, PROJ_DIM)
    assert out["p1"].shape == (B, PROJ_DIM)
    assert out["p2"].shape == (B, PROJ_DIM)
    assert all(bool(jnp.isfinite(v).all()) for v in out.values())
    print("KERNEL_OK")
</pallas_src>

<mosaic_0001>
module attributes {stable_mosaic.version = 11 : i64} {
  func.func @_simsiam_kernel(%arg0: i32, %arg1: memref<16x16x128xbf16, #tpu.memory_space<vmem>>, %arg2: memref<128x256xbf16, #tpu.memory_space<vmem>>, %arg3: memref<8x256xf32, #tpu.memory_space<vmem>>, %arg4: memref<256x128xbf16, #tpu.memory_space<vmem>>, %arg5: memref<128x64xbf16, #tpu.memory_space<vmem>>, %arg6: memref<8x64xf32, #tpu.memory_space<vmem>>, %arg7: memref<64x256xbf16, #tpu.memory_space<vmem>>, %arg8: memref<8x256xf32, #tpu.memory_space<vmem>>, %arg9: memref<2x8x128xf32, #tpu.memory_space<vmem>>, %arg10: memref<2x8x256xf32, #tpu.memory_space<vmem>>, %arg11: memref<16x256xbf16, #tpu.memory_space<vmem>>, %arg12: memref<16x64xf32, #tpu.memory_space<vmem>>) attributes {dimension_semantics = [#tpu.dimension_semantics<arbitrary>], iteration_bounds = array<i64: 2>, scalar_prefetch = 0 : i64, scratch_operands = 2 : i64, tpu.core_type = #tpu.core_type<tc>, window_params = [{pipeline_mode = #tpu.pipeline_mode<synchronous>, transform_indices = @transform_0, window_bounds = array<i64: 16, 16, 128>}, {pipeline_mode = #tpu.pipeline_mode<synchronous>, transform_indices = @transform_1, window_bounds = array<i64: 128, 256>}, {pipeline_mode = #tpu.pipeline_mode<synchronous>, transform_indices = @transform_2, window_bounds = array<i64: 8, 256>}, {transform_indices = @transform_3, window_bounds = array<i64: 256, 128>}, {transform_indices = @transform_4, window_bounds = array<i64: 128, 64>}, {pipeline_mode = #tpu.pipeline_mode<synchronous>, transform_indices = @transform_5, window_bounds = array<i64: 8, 64>}, {pipeline_mode = #tpu.pipeline_mode<synchronous>, transform_indices = @transform_6, window_bounds = array<i64: 64, 256>}, {pipeline_mode = #tpu.pipeline_mode<synchronous>, transform_indices = @transform_7, window_bounds = array<i64: 8, 256>}, {transform_indices = @transform_8, window_bounds = array<i64: 2, 8, 128>}, {pipeline_mode = #tpu.pipeline_mode<synchronous>, transform_indices = @transform_9, window_bounds = array<i64: 2, 8, 256>}]} {
    %c0_i32 = arith.constant 0 : i32
    %0 = arith.cmpi eq, %arg0, %c0_i32 : i32
    %1 = arith.extui %0 : i1 to i32
    %c0_i32_0 = arith.constant 0 : i32
    %2 = arith.cmpi ne, %1, %c0_i32_0 : i32
    scf.if %2 {
      %c0_20 = arith.constant 0 : index
      %c0_21 = arith.constant 0 : index
      %c0_22 = arith.constant 0 : index
      %35 = vector.load %arg1[%c0_20, %c0_21, %c0_22] : memref<16x16x128xbf16, #tpu.memory_space<vmem>>, vector<16x16x128xbf16>
      %36 = arith.extf %35 : vector<16x16x128xbf16> to vector<16x16x128xf32>
      %cst_23 = arith.constant dense<0.000000e+00> : vector<16x128xf32>
      %37 = vector.multi_reduction <add>, %36, %cst_23 [1] : vector<16x16x128xf32> to vector<16x128xf32>
      %38 = arith.truncf %37 : vector<16x128xf32> to vector<16x128xbf16>
      %c0_24 = arith.constant 0 : index
      %c0_25 = arith.constant 0 : index
      %39 = vector.load %arg2[%c0_24, %c0_25] : memref<128x256xbf16, #tpu.memory_space<vmem>>, vector<128x256xbf16>
      %cst_26 = arith.constant dense<0.000000e+00> : vector<16x256xf32>
      %40 = tpu.matmul %38, %39, %cst_26 {dimension_numbers = #tpu.dot_dimension_numbers<[1], [0], [0], [1], [0, 0, 1, 1], [], []>} : vector<16x128xbf16>, vector<128x256xbf16>, vector<16x256xf32> -> vector<16x256xf32>
      %c0_27 = arith.constant 0 : index
      %c0_28 = arith.constant 0 : index
      %41 = vector.load %arg3[%c0_27, %c0_28] : memref<8x256xf32, #tpu.memory_space<vmem>>, vector<1x256xf32>
      %c1 = arith.constant 1 : index
      %c0_29 = arith.constant 0 : index
      %42 = vector.load %arg3[%c1, %c0_29] : memref<8x256xf32, #tpu.memory_space<vmem>>, vector<1x256xf32>
      %43 = vector.shape_cast %40 : vector<16x256xf32> to vector<2x8x256xf32>
      %cst_30 = arith.constant dense<0.000000e+00> : vector<2x256xf32>
      %44 = vector.multi_reduction <add>, %43, %cst_30 [1] : vector<2x8x256xf32> to vector<2x256xf32>
      %45 = vector.shape_cast %44 : vector<2x256xf32> to vector<2x1x256xf32>
      %cst_31 = arith.constant 8.000000e+00 : f32
      %46 = vector.broadcast %cst_31 : f32 to vector<2x1x256xf32>
      %47 = arith.divf %45, %46 : vector<2x1x256xf32>
      %48 = vector.broadcast %47 : vector<2x1x256xf32> to vector<2x8x256xf32>
      %49 = arith.subf %43, %48 : vector<2x8x256xf32>
      %50 = arith.mulf %49, %49 : vector<2x8x256xf32>
      %cst_32 = arith.constant dense<0.000000e+00> : vector<2x256xf32>
      %51 = vector.multi_reduction <add>, %50, %cst_32 [1] : vector<2x8x256xf32> to vector<2x256xf32>
      %52 = vector.shape_cast %51 : vector<2x256xf32> to vector<2x1x256xf32>
      %cst_33 = arith.constant 8.000000e+00 : f32
      %53 = vector.broadcast %cst_33 : f32 to vector<2x1x256xf32>
      %54 = arith.divf %52, %53 : vector<2x1x256xf32>
      %cst_34 = arith.constant 9.99999974E-6 : f32
      %55 = vector.broadcast %cst_34 : f32 to vector<2x1x256xf32>
      %56 = arith.addf %54, %55 : vector<2x1x256xf32>
      %57 = math.rsqrt %56 : vector<2x1x256xf32>
      %58 = vector.broadcast %57 : vector<2x1x256xf32> to vector<2x8x256xf32>
      %59 = arith.mulf %49, %58 : vector<2x8x256xf32>
      %60 = vector.shape_cast %59 : vector<2x8x256xf32> to vector<16x256xf32>
      %61 = vector.broadcast %41 : vector<1x256xf32> to vector<16x256xf32>
      %62 = arith.mulf %60, %61 : vector<16x256xf32>
      %63 = vector.broadcast %42 : vector<1x256xf32> to vector<16x256xf32>
      %64 = arith.addf %62, %63 : vector<16x256xf32>
      %cst_35 = arith.constant 0.000000e+00 : f32
      %65 = vector.broadcast %cst_35 : f32 to vector<16x256xf32>
      %66 = arith.maximumf %64, %65 : vector<16x256xf32>
      %67 = arith.truncf %66 : vector<16x256xf32> to vector<16x256xbf16>
      %c0_36 = arith.constant 0 : index
      %c0_37 = arith.constant 0 : index
      %68 = vector.load %arg11[%c0_36, %c0_37] : memref<16x256xbf16, #tpu.memory_space<vmem>>, vector<16x256xbf16>
      tpu.vector_store %arg11[%c0_36, %c0_37], %67 {strides = array<i32>} : memref<16x256xbf16, #tpu.memory_space<vmem>>, vector<16x256xbf16>,
      %cst_38 = arith.constant 0.000000e+00 : f32
      %69 = vector.broadcast %cst_38 : f32 to vector<16x64xf32>
      %c0_39 = arith.constant 0 : index
      %c0_40 = arith.constant 0 : index
      %70 = vector.load %arg12[%c0_39, %c0_40] : memref<16x64xf32, #tpu.memory_space<vmem>>, vector<16x64xf32>
      tpu.vector_store %arg12[%c0_39, %c0_40], %69 {strides = array<i32>} : memref<16x64xf32, #tpu.memory_space<vmem>>, vector<16x64xf32>,
    } else {
    }
    %c0 = arith.constant 0 : index
    %c0_1 = arith.constant 0 : index
    %3 = vector.load %arg11[%c0, %c0_1] : memref<16x256xbf16, #tpu.memory_space<vmem>>, vector<16x256xbf16>
    %c0_2 = arith.constant 0 : index
    %c0_3 = arith.constant 0 : index
    %4 = vector.load %arg4[%c0_2, %c0_3] : memref<256x128xbf16, #tpu.memory_space<vmem>>, vector<256x128xbf16>
    %cst = arith.constant dense<0.000000e+00> : vector<16x128xf32>
    %5 = tpu.matmul %3, %4, %cst {dimension_numbers = #tpu.dot_dimension_numbers<[1], [0], [0], [1], [0, 0, 1, 1], [], []>} : vector<16x256xbf16>, vector<256x128xbf16>, vector<16x128xf32> -> vector<16x128xf32>
    %6 = vector.shape_cast %5 : vector<16x128xf32> to vector<2x8x128xf32>
    %cst_4 = arith.constant dense<0.000000e+00> : vector<2x128xf32>
    %7 = vector.multi_reduction <add>, %6, %cst_4 [1] : vector<2x8x128xf32> to vector<2x128xf32>
    %8 = vector.shape_cast %7 : vector<2x128xf32> to vector<2x1x128xf32>
    %cst_5 = arith.constant 8.000000e+00 : f32
    %9 = vector.broadcast %cst_5 : f32 to vector<2x1x128xf32>
    %10 = arith.divf %8, %9 : vector<2x1x128xf32>
    %11 = vector.broadcast %10 : vector<2x1x128xf32> to vector<2x8x128xf32>
    %12 = arith.subf %6, %11 : vector<2x8x128xf32>
    %13 = arith.mulf %12, %12 : vector<2x8x128xf32>
    %cst_6 = arith.constant dense<0.000000e+00> : vector<2x128xf32>
    %14 = vector.multi_reduction <add>, %13, %cst_6 [1] : vector<2x8x128xf32> to vector<2x128xf32>
    %15 = vector.shape_cast %14 : vector<2x128xf32> to vector<2x1x128xf32>
    %cst_7 = arith.constant 8.000000e+00 : f32
    %16 = vector.broadcast %cst_7 : f32 to vector<2x1x128xf32>
    %17 = arith.divf %15, %16 : vector<2x1x128xf32>
    %cst_8 = arith.constant 9.99999974E-6 : f32
    %18 = vector.broadcast %cst_8 : f32 to vector<2x1x128xf32>
    %19 = arith.addf %17, %18 : vector<2x1x128xf32>
    %20 = math.rsqrt %19 : vector<2x1x128xf32>
    %21 = vector.broadcast %20 : vector<2x1x128xf32> to vector<2x8x128xf32>
    %22 = arith.mulf %12, %21 : vector<2x8x128xf32>
    %23 = vector.shape_cast %22 : vector<2x8x128xf32> to vector<16x128xf32>
    %24 = vector.shape_cast %23 : vector<16x128xf32> to vector<2x8x128xf32>
    %c0_9 = arith.constant 0 : index
    %c0_10 = arith.constant 0 : index
    %c0_11 = arith.constant 0 : index
    %25 = vector.load %arg9[%c0_9, %c0_10, %c0_11] : memref<2x8x128xf32, #tpu.memory_space<vmem>>, vector<2x8x128xf32>
    tpu.vector_store %arg9[%c0_9, %c0_10, %c0_11], %24 {strides = array<i32>} : memref<2x8x128xf32, #tpu.memory_space<vmem>>, vector<2x8x128xf32>,
    %c0_12 = arith.constant 0 : index
    %c0_13 = arith.constant 0 : index
    %26 = vector.load %arg12[%c0_12, %c0_13] : memref<16x64xf32, #tpu.memory_space<vmem>>, vector<16x64xf32>
    %27 = arith.truncf %23 : vector<16x128xf32> to vector<16x128xbf16>
    %c0_14 = arith.constant 0 : index
    %c0_15 = arith.constant 0 : index
    %28 = vector.load %arg5[%c0_14, %c0_15] : memref<128x64xbf16, #tpu.memory_space<vmem>>, vector<128x64xbf16>
    %cst_16 = arith.constant dense<0.000000e+00> : vector<16x64xf32>
    %29 = tpu.matmul %27, %28, %cst_16 {dimension_numbers = #tpu.dot_dimension_numbers<[1], [0], [0], [1], [0, 0, 1, 1], [], []>} : vector<16x128xbf16>, vector<128x64xbf16>, vector<16x64xf32> -> vector<16x64xf32>
    %30 = arith.addf %26, %29 : vector<16x64xf32>
    %c0_17 = arith.constant 0 : index
    %c0_18 = arith.constant 0 : index
    %31 = vector.load %arg12[%c0_17, %c0_18] : memref<16x64xf32, #tpu.memory_space<vmem>>, vector<16x64xf32>
    tpu.vector_store %arg12[%c0_17, %c0_18], %30 {strides = array<i32>} : memref<16x64xf32, #tpu.memory_space<vmem>>, vector<16x64xf32>,
    %c1_i32 = arith.constant 1 : i32
    %32 = arith.cmpi eq, %arg0, %c1_i32 : i32
    %33 = arith.extui %32 : i1 to i32
    %c0_i32_19 = arith.constant 0 : i32
    %34 = arith.cmpi ne, %33, %c0_i32_19 : i32
    scf.if %34 {
      %c0_20 = arith.constant 0 : index
      %c0_21 = arith.constant 0 : index
      %35 = vector.load %arg12[%c0_20, %c0_21] : memref<16x64xf32, #tpu.memory_space<vmem>>, vector<16x64xf32>
      %c0_22 = arith.constant 0 : index
      %c0_23 = arith.constant 0 : index
      %36 = vector.load %arg6[%c0_22, %c0_23] : memref<8x64xf32, #tpu.memory_space<vmem>>, vector<1x64xf32>
      %c1 = arith.constant 1 : index
      %c0_24 = arith.constant 0 : index
      %37 = vector.load %arg6[%c1, %c0_24] : memref<8x64xf32, #tpu.memory_space<vmem>>, vector<1x64xf32>
      %38 = vector.shape_cast %35 : vector<16x64xf32> to vector<2x8x64xf32>
      %cst_25 = arith.constant dense<0.000000e+00> : vector<2x64xf32>
      %39 = vector.multi_reduction <add>, %38, %cst_25 [1] : vector<2x8x64xf32> to vector<2x64xf32>
      %40 = vector.shape_cast %39 : vector<2x64xf32> to vector<2x1x64xf32>
      %cst_26 = arith.constant 8.000000e+00 : f32
      %41 = vector.broadcast %cst_26 : f32 to vector<2x1x64xf32>
      %42 = arith.divf %40, %41 : vector<2x1x64xf32>
      %43 = vector.broadcast %42 : vector<2x1x64xf32> to vector<2x8x64xf32>
      %44 = arith.subf %38, %43 : vector<2x8x64xf32>
      %45 = arith.mulf %44, %44 : vector<2x8x64xf32>
      %cst_27 = arith.constant dense<0.000000e+00> : vector<2x64xf32>
      %46 = vector.multi_reduction <add>, %45, %cst_27 [1] : vector<2x8x64xf32> to vector<2x64xf32>
      %47 = vector.shape_cast %46 : vector<2x64xf32> to vector<2x1x64xf32>
      %cst_28 = arith.constant 8.000000e+00 : f32
      %48 = vector.broadcast %cst_28 : f32 to vector<2x1x64xf32>
      %49 = arith.divf %47, %48 : vector<2x1x64xf32>
      %cst_29 = arith.constant 9.99999974E-6 : f32
      %50 = vector.broadcast %cst_29 : f32 to vector<2x1x64xf32>
      %51 = arith.addf %49, %50 : vector<2x1x64xf32>
      %52 = math.rsqrt %51 : vector<2x1x64xf32>
      %53 = vector.broadcast %52 : vector<2x1x64xf32> to vector<2x8x64xf32>
      %54 = arith.mulf %44, %53 : vector<2x8x64xf32>
      %55 = vector.shape_cast %54 : vector<2x8x64xf32> to vector<16x64xf32>
      %56 = vector.broadcast %36 : vector<1x64xf32> to vector<16x64xf32>
      %57 = arith.mulf %55, %56 : vector<16x64xf32>
      %58 = vector.broadcast %37 : vector<1x64xf32> to vector<16x64xf32>
      %59 = arith.addf %57, %58 : vector<16x64xf32>
      %cst_30 = arith.constant 0.000000e+00 : f32
      %60 = vector.broadcast %cst_30 : f32 to vector<16x64xf32>
      %61 = arith.maximumf %59, %60 : vector<16x64xf32>
      %62 = arith.truncf %61 : vector<16x64xf32> to vector<16x64xbf16>
      %c0_31 = arith.constant 0 : index
      %c0_32 = arith.constant 0 : index
      %63 = vector.load %arg7[%c0_31, %c0_32] : memref<64x256xbf16, #tpu.memory_space<vmem>>, vector<64x256xbf16>
      %cst_33 = arith.constant dense<0.000000e+00> : vector<16x256xf32>
      %64 = tpu.matmul %62, %63, %cst_33 {dimension_numbers = #tpu.dot_dimension_numbers<[1], [0], [0], [1], [0, 0, 1, 1], [], []>} : vector<16x64xbf16>, vector<64x256xbf16>, vector<16x256xf32> -> vector<16x256xf32>
      %c0_34 = arith.constant 0 : index
      %c0_35 = arith.constant 0 : index
      %65 = vector.load %arg8[%c0_34, %c0_35] : memref<8x256xf32, #tpu.memory_space<vmem>>, vector<1x256xf32>
      %66 = vector.broadcast %65 : vector<1x256xf32> to vector<16x256xf32>
      %67 = arith.addf %64, %66 : vector<16x256xf32>
      %68 = vector.shape_cast %67 : vector<16x256xf32> to vector<2x8x256xf32>
      %c0_36 = arith.constant 0 : index
      %c0_37 = arith.constant 0 : index
      %c0_38 = arith.constant 0 : index
      %69 = vector.load %arg10[%c0_36, %c0_37, %c0_38] : memref<2x8x256xf32, #tpu.memory_space<vmem>>, vector<2x8x256xf32>
      tpu.vector_store %arg10[%c0_36, %c0_37, %c0_38], %68 {strides = array<i32>} : memref<2x8x256xf32, #tpu.memory_space<vmem>>, vector<2x8x256xf32>,
    } else {
    }
    return
  }
  func.func @transform_0(%arg0: i32) -> (i32, i32, i32) {
    %c0_i32 = arith.constant 0 : i32
    %c0_i32_0 = arith.constant 0 : i32
    %c0_i32_1 = arith.constant 0 : i32
    %c0_i32_2 = arith.constant 0 : i32
    return %c0_i32, %c0_i32_0, %c0_i32_1 : i32, i32, i32
  }
  func.func @transform_1(%arg0: i32) -> (i32, i32) {
    %c0_i32 = arith.constant 0 : i32
    %c0_i32_0 = arith.constant 0 : i32
    %c0_i32_1 = arith.constant 0 : i32
    return %c0_i32, %c0_i32_0 : i32, i32
  }
  func.func @transform_2(%arg0: i32) -> (i32, i32) {
    %c0_i32 = arith.constant 0 : i32
    %c0_i32_0 = arith.constant 0 : i32
    %c0_i32_1 = arith.constant 0 : i32
    return %c0_i32, %c0_i32_0 : i32, i32
  }
  func.func @transform_3(%arg0: i32) -> (i32, i32) {
    %c0_i32 = arith.constant 0 : i32
    %c0_i32_0 = arith.constant 0 : i32
    return %c0_i32, %arg0 : i32, i32
  }
  func.func @transform_4(%arg0: i32) -> (i32, i32) {
    %c0_i32 = arith.constant 0 : i32
    %c0_i32_0 = arith.constant 0 : i32
    return %arg0, %c0_i32 : i32, i32
  }
  func.func @transform_5(%arg0: i32) -> (i32, i32) {
    %c0_i32 = arith.constant 0 : i32
    %c0_i32_0 = arith.constant 0 : i32
    %c0_i32_1 = arith.constant 0 : i32
    return %c0_i32, %c0_i32_0 : i32, i32
  }
  func.func @transform_6(%arg0: i32) -> (i32, i32) {
    %c0_i32 = arith.constant 0 : i32
    %c0_i32_0 = arith.constant 0 : i32
    %c0_i32_1 = arith.constant 0 : i32
    return %c0_i32, %c0_i32_0 : i32, i32
  }
  func.func @transform_7(%arg0: i32) -> (i32, i32) {
    %c0_i32 = arith.constant 0 : i32
    %c0_i32_0 = arith.constant 0 : i32
    %c0_i32_1 = arith.constant 0 : i32
    return %c0_i32, %c0_i32_0 : i32, i32
  }
  func.func @transform_8(%arg0: i32) -> (i32, i32, i32) {
    %c0_i32 = arith.constant 0 : i32
    %c0_i32_0 = arith.constant 0 : i32
    %c0_i32_1 = arith.constant 0 : i32
    return %c0_i32, %c0_i32_0, %arg0 : i32, i32, i32
  }
  func.func @transform_9(%arg0: i32) -> (i32, i32, i32) {
    %c0_i32 = arith.constant 0 : i32
    %c0_i32_0 = arith.constant 0 : i32
    %c0_i32_1 = arith.constant 0 : i32
    %c0_i32_2 = arith.constant 0 : i32
    return %c0_i32, %c0_i32_0, %c0_i32_1 : i32, i32, i32
  }
}

</mosaic_0001>

<bundles_post_ra>
// kernel: simsiam_forward.1
= control target key start
LH: loop header
LB: loop body
LE: loop exit
PB: predicated region body
PF: predicated region fallthrough
CT: control target
= control target key end

     0   :  { %s2026_s30 = smov 0   ;;  %s2028_s10 = smov 0   ;;  %s2446_s0 = inlined_call_operand.vmem [shape: bf16[16,16,128], index: 0, kind: input, shape index: {}]   ;;  %s2447_s1 = inlined_call_operand.vmem [shape: bf16[128,256], index: 1, kind: input, shape index: {}]   ;;  %s2448_s2 = inlined_call_operand.vmem [shape: f32[8,256], index: 2, kind: input, shape index: {}]   ;;  %s2449_s3 = inlined_call_operand.vmem [shape: bf16[256,256], index: 3, kind: input, shape index: {}]   ;;  %s2450_s4 = inlined_call_operand.vmem [shape: bf16[256,64], index: 4, kind: input, shape index: {}]   ;;  %s2451_s5 = inlined_call_operand.vmem [shape: f32[8,64], index: 5, kind: input, shape index: {}]   ;;  %s2452_s6 = inlined_call_operand.vmem [shape: bf16[64,256], index: 6, kind: input, shape index: {}]   ;;  %s2453_s7 = inlined_call_operand.vmem [shape: f32[8,256], index: 7, kind: input, shape index: {}]   ;;  %s2454_s8 = inlined_call_operand.vmem [shape: f32[2,8,256], index: 8, kind: output, shape index: {0}]   ;;  %s2455_s9 = inlined_call_operand.vmem [shape: f32[2,8,256], index: 9, kind: output, shape index: {1}]  }
   0x1   :  { %s2030_s11 = smov 0  }
   0x2 LB: > { %s2042_s12 = sadd.s32 4294967295, %s1969_s11   ;;  %s2045_s13 = sadd.s32 1, %s1969_s11   ;;  %s1969_s11 = sphi %s2030_s11, %s2459_s11   ;;  %s1965_s10 = sphi %s2028_s10, %s2458_s10   ;;  %s1961_s30 = sphi %s2026_s30, %s2457_s30  }
   0x3   : > { %s87_s14 = ssub.s32 %s1969_s11, %s2045_s13  ;;  %s90_s15 = sadd.s32 1, %s1965_s10 }
   0x4   : > { %p88_p0 = scmp.eq.s32.totalorder %s87_s14, 0  ;;  %p97_p1 = scmp.ne.s32.totalorder %s1965_s10, %s1961_s30 }
   0x5   : > { %p98_p2 = scmp.eq.s32.totalorder %s1969_s11, 0  ;;  %p216_p3 = scmp.eq.s32.totalorder %s2042_s12, 1 }
   0x6   : > { %s2055_s16 = scalar_select %p88_p0, %s1965_s10, %s90_s15  }
   0x7   : > { %p99_p4 = por %p98_p2, %p97_p1  ;;  %p2057_p5 = por %p216_p3, %p97_p1 }
   0x8   : > { %p1646_p6 = scmp.ge.s32.totalorder %s1969_s11, 2 }
   0xa   : > { %277 = sbr.rel (%p1646_p6) target bundleno = 42 (0x2a), region = 40 }
  0x11   : > { %280 = sbr.rel (!%p99_p4) target bundleno = 42 (0x2a), region = 44  ;;  %s282_s18 = sand.u32 (%p99_p4), 1, %s1965_s10  }
  0x12   : > { %s1648_s19 = sshll.u32 (%p99_p4), %s1969_s11, 2  ;;  %s1647_s20 = sshll.u32 (%p99_p4), %s282_s18, 7 }
  0x13   : > { %s2067_s23 = scalar_lea.vmem (%p99_p4), %s2449_s3, %s1648_s19  ;;  %s2071_s24 = scalar_lea.vmem (%p99_p4), [#allocation4], %s1647_s20 }
  0x14   : > { %v302_v0 = vld [vmem:[%s2067_s23] sm:$0xf] (%p99_p4)  ;;  %v304_v1 = vld [vmem:[%s2067_s23 + $0x8] sm:$0xf] (%p99_p4)  ;;  %v306_v2 = vld [vmem:[%s2067_s23 + $0x10] sm:$0xf] (%p99_p4) }
  0x15   : > { %303 = vst [vmem:[%s2071_s24] sm:$0xf] (%p99_p4), %v302_v0  ;;  %305 = vst [vmem:[%s2071_s24 + $0x4] sm:$0xf] (%p99_p4), %v304_v1  ;;  %v308_v3 = vld [vmem:[%s2067_s23 + $0x18] sm:$0xf] (%p99_p4) }
  0x16   : > { %v310_v4 = vld [vmem:[%s2067_s23 + $0x20] sm:$0xf] (%p99_p4)  ;;  %307 = vst [vmem:[%s2071_s24 + $0x8] sm:$0xf] (%p99_p4), %v306_v2  ;;  %309 = vst [vmem:[%s2071_s24 + $0xc] sm:$0xf] (%p99_p4), %v308_v3 }
  0x17   : > { %311 = vst [vmem:[%s2071_s24 + $0x10] sm:$0xf] (%p99_p4), %v310_v4  ;;  %v312_v5 = vld [vmem:[%s2067_s23 + $0x28] sm:$0xf] (%p99_p4)  ;;  %v314_v6 = vld [vmem:[%s2067_s23 + $0x30] sm:$0xf] (%p99_p4) }
  0x18   : > { %v316_v7 = vld [vmem:[%s2067_s23 + $0x38] sm:$0xf]  ;;  %313 = vst [vmem:[%s2071_s24 + $0x14] sm:$0xf] %v312_v5  ;;  %315 = vst [vmem:[%s2071_s24 + $0x18] sm:$0xf] %v314_v6 }
  0x19   : > { %317 = vst [vmem:[%s2071_s24 + $0x1c] sm:$0xf] %v316_v7  ;;  %v318_v8 = vld [vmem:[%s2067_s23 + $0x40] sm:$0xf]  ;;  %v320_v9 = vld [vmem:[%s2067_s23 + $0x48] sm:$0xf] }
  0x1a   : > { %v322_v10 = vld [vmem:[%s2067_s23 + $0x50] sm:$0xf]  ;;  %319 = vst [vmem:[%s2071_s24 + $0x20] sm:$0xf] %v318_v8  ;;  %321 = vst [vmem:[%s2071_s24 + $0x24] sm:$0xf] %v320_v9 }
  0x1b   : > { %323 = vst [vmem:[%s2071_s24 + $0x28] sm:$0xf] %v322_v10  ;;  %v324_v11 = vld [vmem:[%s2067_s23 + $0x58] sm:$0xf]  ;;  %v326_v12 = vld [vmem:[%s2067_s23 + $0x60] sm:$0xf] }
  0x1c   : > { %v328_v13 = vld [vmem:[%s2067_s23 + $0x68] sm:$0xf]  ;;  %325 = vst [vmem:[%s2071_s24 + $0x2c] sm:$0xf] %v324_v11  ;;  %327 = vst [vmem:[%s2071_s24 + $0x30] sm:$0xf] %v326_v12 }
  0x1d   : > { %329 = vst [vmem:[%s2071_s24 + $0x34] sm:$0xf] %v328_v13  ;;  %v330_v14 = vld [vmem:[%s2067_s23 + $0x70] sm:$0xf]  ;;  %v332_v15 = vld [vmem:[%s2067_s23 + $0x78] sm:$0xf] }
  0x1e   : > { %v334_v16 = vld [vmem:[%s2067_s23 + $0x80] sm:$0xf]  ;;  %331 = vst [vmem:[%s2071_s24 + $0x38] sm:$0xf] %v330_v14  ;;  %333 = vst [vmem:[%s2071_s24 + $0x3c] sm:$0xf] %v332_v15 }
  0x1f   : > { %335 = vst [vmem:[%s2071_s24 + $0x40] sm:$0xf] %v334_v16  ;;  %v336_v17 = vld [vmem:[%s2067_s23 + $0x88] sm:$0xf]  ;;  %v338_v18 = vld [vmem:[%s2067_s23 + $0x90] sm:$0xf] }
  0x20   : > { %v340_v19 = vld [vmem:[%s2067_s23 + $0x98] sm:$0xf]  ;;  %337 = vst [vmem:[%s2071_s24 + $0x44] sm:$0xf] %v336_v17  ;;  %339 = vst [vmem:[%s2071_s24 + $0x48] sm:$0xf] %v338_v18 }
  0x21   : > { %341 = vst [vmem:[%s2071_s24 + $0x4c] sm:$0xf] %v340_v19  ;;  %v342_v20 = vld [vmem:[%s2067_s23 + $0xa0] sm:$0xf]  ;;  %v344_v21 = vld [vmem:[%s2067_s23 + $0xa8] sm:$0xf] }
  0x22   : > { %v346_v22 = vld [vmem:[%s2067_s23 + $0xb0] sm:$0xf]  ;;  %343 = vst [vmem:[%s2071_s24 + $0x50] sm:$0xf] %v342_v20  ;;  %345 = vst [vmem:[%s2071_s24 + $0x54] sm:$0xf] %v344_v21 }
  0x23   : > { %347 = vst [vmem:[%s2071_s24 + $0x58] sm:$0xf] %v346_v22  ;;  %v348_v23 = vld [vmem:[%s2067_s23 + $0xb8] sm:$0xf]  ;;  %v350_v24 = vld [vmem:[%s2067_s23 + $0xc0] sm:$0xf] }
  0x24   : > { %v352_v25 = vld [vmem:[%s2067_s23 + $0xc8] sm:$0xf]  ;;  %349 = vst [vmem:[%s2071_s24 + $0x5c] sm:$0xf] %v348_v23  ;;  %351 = vst [vmem:[%s2071_s24 + $0x60] sm:$0xf] %v350_v24 }
  0x25   : > { %353 = vst [vmem:[%s2071_s24 + $0x64] sm:$0xf] %v352_v25  ;;  %v354_v26 = vld [vmem:[%s2067_s23 + $0xd0] sm:$0xf]  ;;  %v356_v27 = vld [vmem:[%s2067_s23 + $0xd8] sm:$0xf] }
  0x26   : > { %v358_v28 = vld [vmem:[%s2067_s23 + $0xe0] sm:$0xf]  ;;  %355 = vst [vmem:[%s2071_s24 + $0x68] sm:$0xf] %v354_v26  ;;  %357 = vst [vmem:[%s2071_s24 + $0x6c] sm:$0xf] %v356_v27 }
  0x27   : > { %359 = vst [vmem:[%s2071_s24 + $0x70] sm:$0xf] %v358_v28  ;;  %v360_v29 = vld [vmem:[%s2067_s23 + $0xe8] sm:$0xf]  ;;  %v362_v30 = vld [vmem:[%s2067_s23 + $0xf0] sm:$0xf] }
  0x28   : > { %v364_v31 = vld [vmem:[%s2067_s23 + $0xf8] sm:$0xf]  ;;  %361 = vst [vmem:[%s2071_s24 + $0x74] sm:$0xf] %v360_v29  ;;  %363 = vst [vmem:[%s2071_s24 + $0x78] sm:$0xf] %v362_v30 }
  0x29   : > { %365 = vst [vmem:[%s2071_s24 + $0x7c] sm:$0xf] %v364_v31 }
  0x2a PF: > { %p1649_p7 = scmp.ge.s32.totalorder %s1969_s11, 1  ;;  %p460_p8 = scmp.lt.s32.totalorder %s1969_s11, 3 }
  0x2c   : > { %p461_p9 = pnand %p1649_p7, %p460_p8 }
  0x2d   : > { %s467_s25 = sand.u32 (!%p461_p9), 1, %s1961_s30   ;;  %s1652_s26 = sshll.u32 (!%p461_p9), %s2042_s12, 4 }
  0x2e   : > { %464 = sbr.rel (%p461_p9) target bundleno = 1187 (0x4a3), region = 89  ;;  %s1650_s27 = sshll.u32 (!%p461_p9), %s467_s25, 7 }
  0x2f   : > { %s1651_s28 = sshll.u32 (!%p461_p9), %s467_s25, 4  ;;  %p507_p10 = scmp.lt.s32.totalorder (!%p461_p9), %s1652_s26, 31 }
  0x30   : > { %s2144_s19 = scalar_lea.vmem (!%p461_p9), [#allocation4], %s1650_s27  ;;  %s2146_s20 = scalar_lea.vmem (!%p461_p9), [#allocation5], %s1651_s28 }
  0x31   : > { %p1654_p11 = scmp.ne.s32.totalorder (!%p461_p9), %s2042_s12, 0 }
  0x35   : > { %s2461_s26 = smov (!%p507_p10, %s1652_s26), 31  ;;  %516 = sbr.rel (%p1654_p11) target bundleno = 382 (0x17e), region = 97 }
  0x36   : > { %s1653_s29 = sshll.u32 %s2461_s26, 2  ;;  %v1871_v32 = vld [vmem:[%s2447_s1 + $0x4] ss:$8 sps:$4 sm:$0xff] (!%p1654_p11)   ;;  %v1873_v33 = vld [vmem:[%s2447_s1] ss:$8 sps:$4 sm:$0xff] (!%p1654_p11)   ;;  %v1971_v34 = vmov (!%p1654_p11), 0  }
  0x37   : > { %s2142_s18 = scalar_lea.vmem %s2450_s4, %s1653_s29  ;;  %892 = vmatprep.mubr.bf16.mxu0 (!%p1654_p11), %v1971_v34  ;;  %860 = vmatprep.subr.bf16.mxu0 (!%p1654_p11), %v1871_v32  ;;  %v1874_v35 = vld [vmem:[%s2447_s1 + $0x14] ss:$8 sps:$4 sm:$0xff] (!%p1654_p11)   ;;  %v1876_v36 = vld [vmem:[%s2447_s1 + $0x10] ss:$8 sps:$4 sm:$0xff] (!%p1654_p11)   ;;  %v1877_v37 = vld [vmem:[%s2447_s1 + $0x24] ss:$8 sps:$4 sm:$0xff] (!%p1654_p11)  }
  0x38   : > { %861 = vmatpush1.bf16.msra.mxu0 (!%p1654_p11), %v1873_v33  ;;  %v1879_v38 = vld [vmem:[%s2447_s1 + $0x20] ss:$8 sps:$4 sm:$0xff] (!%p1654_p11)   ;;  %v1880_v39 = vld [vmem:[%s2447_s1 + $0x34] ss:$8 sps:$4 sm:$0xff] (!%p1654_p11)   ;;  %v1882_v40 = vld [vmem:[%s2447_s1 + $0x30] ss:$8 sps:$4 sm:$0xff] (!%p1654_p11)  }
  0x39   : > { %862 = vmatprep.subr.bf16.mxu0 (!%p1654_p11), %v1874_v35  ;;  %v1883_v41 = vld [vmem:[%s2447_s1 + $0x44] ss:$8 sps:$4 sm:$0xff] (!%p1654_p11)   ;;  %v1777_v44 = vld [vmem:[%s2446_s0 + $0x10] sm:$0xff] (!%p1654_p11)   ;;  %v1778_v45 = vld [vmem:[%s2446_s0 + $0x18] sm:$0xff] (!%p1654_p11)   ;;  %vm757_vm0 = vcmask (!%p1654_p11), 1041409   ;;  %vm759_vm1 = vcmask (!%p1654_p11), 1042434  }
  0x3a   : > { %v1713_v42 = vld [vmem:[%s2446_s0] sm:$0xff] (!%p1654_p11)   ;;  %v1776_v43 = vld [vmem:[%s2446_s0 + $0x8] sm:$0xff] (!%p1654_p11)   ;;  %v1781_v50 = vld [vmem:[%s2446_s0 + $0x30] sm:$0xff] (!%p1654_p11)   ;;  %v1722_v53 = vunpack.c.l.bf16 (!%p1654_p11), %v1777_v44  ;;  %v1723_v54 = vunpack.c.h.bf16 (!%p1654_p11), %v1777_v44  ;;  %v1726_v57 = vunpack.c.l.bf16 (!%p1654_p11), %v1778_v45  ;;  %v1727_v58 = vunpack.c.h.bf16 (!%p1654_p11), %v1778_v45 }
  0x3b   : > { %v1714_v46 = vunpack.c.l.bf16 (!%p1654_p11), %v1713_v42  ;;  %v1715_v47 = vunpack.c.h.bf16 (!%p1654_p11), %v1713_v42  ;;  %v1779_v48 = vld [vmem:[%s2446_s0 + $0x20] sm:$0xff] (!%p1654_p11)   ;;  %v1780_v49 = vld [vmem:[%s2446_s0 + $0x28] sm:$0xff] (!%p1654_p11)   ;;  %v1718_v51 = vunpack.c.l.bf16 (!%p1654_p11), %v1776_v43  ;;  %v1719_v52 = vunpack.c.h.bf16 (!%p1654_p11), %v1776_v43  ;;  %v1782_v55 = vld [vmem:[%s2446_s0 + $0x38] sm:$0xff] (!%p1654_p11)  }
  0x3c   : > { %863 = vmatpush1.bf16.msra.mxu0 %v1876_v36  ;;  %v2203_v56 = vld [vmem:[%s2446_s0 + $0x40] sm:$0xff]   ;;  %v1730_v59 = vunpack.c.l.bf16 %v1779_v48  ;;  %v1731_v60 = vunpack.c.h.bf16 %v1779_v48  ;;  %v2208_v61 = vld [vmem:[%s2446_s0 + $0x48] sm:$0xff]   ;;  %v2213_v62 = vld [vmem:[%s2446_s0 + $0x50] sm:$0xff]   ;;  %v1734_v0 = vunpack.c.l.bf16 %v1780_v49  ;;  %v1735_v1 = vunpack.c.h.bf16 %v1780_v49 }
  0x3d   : > { %864 = vmatprep.subr.bf16.mxu0 %v1877_v37  ;;  %v1885_v63 = vld [vmem:[%s2447_s1 + $0x40] ss:$8 sps:$4 sm:$0xff]   ;;  %v1738_v2 = vunpack.c.l.bf16 %v1781_v50  ;;  %v1739_v3 = vunpack.c.h.bf16 %v1781_v50  ;;  %v2221_v4 = vld [vmem:[%s2446_s0 + $0x58] sm:$0xff]   ;;  %v1742_v7 = vunpack.c.l.bf16 %v1782_v55  ;;  %v1743_v8 = vunpack.c.h.bf16 %v1782_v55  ;;  %v1889_v25 = vld [vmem:[%s2447_s1 + $0x64] ss:$8 sps:$4 sm:$0xff]  }
  0x3e   : > { %v2226_v5 = vld [vmem:[%s2446_s0 + $0x60] sm:$0xff]   ;;  %v1886_v6 = vld [vmem:[%s2447_s1 + $0x54] ss:$8 sps:$4 sm:$0xff]   ;;  %v1746_v9 = vunpack.c.l.bf16 %v2203_v56  ;;  %v1747_v10 = vunpack.c.h.bf16 %v2203_v56  ;;  %v2236_v11 = vld [vmem:[%s2446_s0 + $0x68] sm:$0xff]   ;;  %v1750_v12 = vunpack.c.l.bf16 %v2208_v61  ;;  %v1751_v13 = vunpack.c.h.bf16 %v2208_v61 }
  0x3f   : > { %v1754_v14 = vunpack.c.l.bf16 %v2213_v62  ;;  %v1755_v15 = vunpack.c.h.bf16 %v2213_v62  ;;  %v1758_v16 = vunpack.c.l.bf16 %v2221_v4  ;;  %v1759_v17 = vunpack.c.h.bf16 %v2221_v4  ;;  %v1888_v20 = vld [vmem:[%s2447_s1 + $0x50] ss:$8 sps:$4 sm:$0xff]   ;;  %v1892_v43 = vld [vmem:[%s2447_s1 + $0x74] ss:$8 sps:$4 sm:$0xff]  }
  0x40   : > { %865 = vmatpush1.bf16.msra.mxu0 %v1879_v38  ;;  %v1762_v18 = vunpack.c.l.bf16 %v2226_v5  ;;  %v1763_v19 = vunpack.c.h.bf16 %v2226_v5  ;;  %v1766_v21 = vunpack.c.l.bf16 %v2236_v11  ;;  %v1767_v22 = vunpack.c.h.bf16 %v2236_v11  ;;  %v1891_v38 = vld [vmem:[%s2447_s1 + $0x60] ss:$8 sps:$4 sm:$0xff]  }
  0x41   : > { %866 = vmatprep.subr.bf16.mxu0 %v1880_v39  ;;  %v581_v23 = vadd.f32 %v1715_v47, %v1714_v46  ;;  %v588_v24 = vadd.f32 %v1719_v52, %v1718_v51  ;;  %v595_v26 = vadd.f32 %v1723_v54, %v1722_v53  ;;  %v602_v27 = vadd.f32 %v1727_v58, %v1726_v57  ;;  %v1894_v57 = vld [vmem:[%s2447_s1 + $0x70] ss:$8 sps:$4 sm:$0xff]  }
  0x42   : > { %v609_v28 = vadd.f32 %v1731_v60, %v1730_v59  ;;  %v616_v29 = vadd.f32 %v1735_v1, %v1734_v0  ;;  %v623_v32 = vadd.f32 %v1739_v3, %v1738_v2  ;;  %v630_v33 = vadd.f32 %v1743_v8, %v1742_v7  ;;  %v1789_v58 = vld [vmem:[%s2446_s0 + $0x70] sm:$0xff]   ;;  %v1790_v1 = vld [vmem:[%s2446_s0 + $0x78] sm:$0xff]  }
  0x43   : > { %v582_v30 = vrot.slane %v581_v23, 4  ;;  %v589_v31 = vrot.slane %v588_v24, 4  ;;  %v596_v34 = vrot.slane %v595_v26, 4  ;;  %v603_v35 = vrot.slane %v602_v27, 4 }
  0x44   : > { %867 = vmatpush1.bf16.msra.mxu0 %v1882_v40  ;;  %v610_v36 = vrot.slane %v609_v28, 4  ;;  %v617_v37 = vrot.slane %v616_v29, 4  ;;  %v631_v42 = vrot.slane %v630_v33, 4  ;;  %v665_v56 = vadd.f32 %v1763_v19, %v1762_v18 }
  0x45   : > { %868 = vmatprep.subr.bf16.mxu0 %v1883_v41  ;;  %v583_v39 = vadd.f32 %v582_v30, %v581_v23  ;;  %v590_v40 = vadd.f32 %v589_v31, %v588_v24  ;;  %v624_v41 = vrot.slane %v623_v32, 4  ;;  %v597_v44 = vadd.f32 %v596_v34, %v595_v26 }
  0x46   : > { %v604_v45 = vadd.f32 %v603_v35, %v602_v27  ;;  %v611_v46 = vadd.f32 %v610_v36, %v609_v28  ;;  %v618_v47 = vadd.f32 %v617_v37, %v616_v29  ;;  %v632_v51 = vadd.f32 %v631_v42, %v630_v33 }
  0x47   : > { %v584_v48 = vrot.slane %v583_v39, 2  ;;  %v591_v49 = vrot.slane %v590_v40, 2  ;;  %v625_v50 = vadd.f32 %v624_v41, %v623_v32  ;;  %v598_v52 = vrot.slane %v597_v44, 2 }
  0x48   : > { %869 = vmatpush1.bf16.msra.mxu0 %v1885_v63  ;;  %v605_v53 = vrot.slane %v604_v45, 2  ;;  %v612_v54 = vrot.slane %v611_v46, 2  ;;  %v619_v55 = vrot.slane %v618_v47, 2  ;;  %v633_v0 = vrot.slane %v632_v51, 2 }
  0x49   : > { %870 = vmatprep.subr.bf16.mxu0 %v1886_v6  ;;  %v585_v59 = vadd.f32 %v584_v48, %v583_v39  ;;  %v592_v60 = vadd.f32 %v591_v49, %v590_v40  ;;  %v626_v63 = vrot.slane %v625_v50, 2  ;;  %v599_v2 = vadd.f32 %v598_v52, %v597_v44 }
  0x4a   : > { %v606_v3 = vadd.f32 %v605_v53, %v604_v45  ;;  %v2269_v6 = vadd.f32 %v612_v54, %v611_v46  ;;  %v2271_v7 = vadd.f32 %v619_v55, %v618_v47  ;;  %v2275_v24 = vadd.f32 %v633_v0, %v632_v51 }
  0x4b   : > { %v586_v8 = vrot.slane %v585_v59, 1  ;;  %v2273_v23 = vadd.f32 %v626_v63, %v625_v50  ;;  %v1771_v26 = vunpack.c.h.bf16 %v1789_v58  ;;  %v600_v27 = vrot.slane %v599_v2, 1 }
  0x4c   : > { %871 = vmatpush1.bf16.msra.mxu0 %v1888_v20  ;;  %v593_v20 = vrot.slane %v592_v60, 1  ;;  %v607_v28 = vrot.slane %v606_v3, 1  ;;  %v1774_v29 = vunpack.c.l.bf16 %v1790_v1  ;;  %v1775_v30 = vunpack.c.h.bf16 %v1790_v1 }
  0x4d   : > { %872 = vmatprep.subr.bf16.mxu0 %v1889_v25  ;;  %v1770_v25 = vunpack.c.l.bf16 %v1789_v58  ;;  %v614_v31 = vrot.slane %v2269_v6, 1  ;;  %v621_v32 = vrot.slane %v2271_v7, 1  ;;  %v2279_v33 = vadd.f32 %v586_v8, %v585_v59 }
  0x4e   : > { %v2281_v34 = vadd.f32 %v593_v20, %v592_v60  ;;  %v628_v35 = vrot.slane %v2273_v23, 1  ;;  %v635_v36 = vrot.slane %v2275_v24, 1  ;;  %v2285_v37 = vadd.f32 %v600_v27, %v599_v2 }
  0x4f   : > { %v637_v39 = vadd.f32 %v1747_v10, %v1746_v9  ;;  %v644_v40 = vadd.f32 %v1751_v13, %v1750_v12  ;;  %v651_v41 = vadd.f32 %v1755_v15, %v1754_v14  ;;  %v658_v42 = vadd.f32 %v1759_v17, %v1758_v16 }
  0x50   : > { %873 = vmatpush1.bf16.msra.mxu0 %v1891_v38  ;;  %v2287_v38 = vadd.f32 %v607_v28, %v606_v3  ;;  %v672_v61 = vadd.f32 %v1767_v22, %v1766_v21  ;;  %v679_v12 = vadd.f32 %v1771_v26, %v1770_v25  ;;  %v686_v62 = vadd.f32 %v1775_v30, %v1774_v29 }
  0x51   : > { %874 = vmatprep.subr.bf16.mxu0 %v1892_v43  ;;  %v638_v9 = vrot.slane %v637_v39, 4  ;;  %v645_v10 = vrot.slane %v644_v40, 4  ;;  %v652_v13 = vrot.slane %v651_v41, 4  ;;  %v659_v14 = vrot.slane %v658_v42, 4 }
  0x52   : > { %v666_v15 = vrot.slane %v665_v56, 4  ;;  %v673_v43 = vrot.slane %v672_v61, 4  ;;  %v680_v17 = vrot.slane %v679_v12, 4  ;;  %v687_v44 = vrot.slane %v686_v62, 4 }
  0x53   : > { %v639_v4 = vadd.f32 %v638_v9, %v637_v39  ;;  %v646_v16 = vadd.f32 %v645_v10, %v644_v40  ;;  %v653_v45 = vadd.f32 %v652_v13, %v651_v41  ;;  %v660_v5 = vadd.f32 %v659_v14, %v658_v42 }
  0x54   : > { %875 = vmatpush1.bf16.msra.mxu0 %v1894_v57  ;;  %v667_v18 = vadd.f32 %v666_v15, %v665_v56  ;;  %v674_v19 = vadd.f32 %v673_v43, %v672_v61  ;;  %v681_v11 = vadd.f32 %v680_v17, %v679_v12  ;;  %v688_v21 = vadd.f32 %v687_v44, %v686_v62 }
  0x55   : > { %v640_v46 = vrot.slane %v639_v4, 2  ;;  %v647_v47 = vrot.slane %v646_v16, 2  ;;  %v654_v22 = vrot.slane %v653_v45, 2  ;;  %v661_v48 = vrot.slane %v660_v5, 2 }
  0x56   : > { %v668_v49 = vrot.slane %v667_v18, 2  ;;  %v675_v50 = vrot.slane %v674_v19, 2  ;;  %v682_v53 = vrot.slane %v681_v11, 2  ;;  %v689_v54 = vrot.slane %v688_v21, 2 }
  0x57   : > { %v641_v51 = vadd.f32 %v640_v46, %v639_v4  ;;  %v648_v52 = vadd.f32 %v647_v47, %v646_v16  ;;  %v655_v55 = vadd.f32 %v654_v22, %v653_v45  ;;  %v662_v57 = vadd.f32 %v661_v48, %v660_v5 }
  0x58   : > { %v669_v58 = vadd.f32 %v668_v49, %v667_v18  ;;  %v676_v59 = vadd.f32 %v675_v50, %v674_v19  ;;  %v683_v0 = vadd.f32 %v682_v53, %v681_v11  ;;  %v690_v1 = vadd.f32 %v689_v54, %v688_v21 }
  0x59   : > { %v642_v60 = vrot.slane %v641_v51, 1  ;;  %v649_v63 = vrot.slane %v648_v52, 1  ;;  %v656_v2 = vrot.slane %v655_v55, 1  ;;  %v663_v3 = vrot.slane %v662_v57, 1 }
  0x5a   : > { %v670_v8 = vrot.slane %v669_v58, 1  ;;  %v677_v20 = vrot.slane %v676_v59, 1  ;;  %v684_v27 = vrot.slane %v683_v0, 1  ;;  %v691_v28 = vrot.slane %v690_v1, 1 }
  0x5b   : > { %v643_v25 = vadd.f32 %v642_v60, %v641_v51  ;;  %v650_v26 = vadd.f32 %v649_v63, %v648_v52  ;;  %v615_v29 = vadd.f32 %v614_v31, %v2269_v6  ;;  %v657_v30 = vadd.f32 %v656_v2, %v655_v55 }
  0x5c   : > { %v664_v39 = vadd.f32 %v663_v3, %v662_v57  ;;  %v671_v40 = vadd.f32 %v670_v8, %v669_v58  ;;  %vm761_vm2 = vcmask 1043459   ;;  %v622_v41 = vadd.f32 %v621_v32, %v2271_v7 }
  0x5d   : > { %v678_v42 = vadd.f32 %v677_v20, %v676_v59  ;;  %v693_v56 = vpack.c.bf16 %v2279_v33, %v2279_v33  ;;  %v694_v61 = vpack.c.bf16 %v2281_v34, %v2281_v34  ;;  %vm763_vm3 = vcmask 1044484  }
  0x5e   : > { %v629_v6 = vadd.f32 %v628_v35, %v2273_v23  ;;  %v636_v31 = vadd.f32 %v635_v36, %v2275_v24  ;;  %v685_v9 = vadd.f32 %v684_v27, %v683_v0  ;;  %v695_v7 = vpack.c.bf16 %v2285_v37, %v2285_v37 }
  0x5f   : > { %vm765_vm4 = vcmask 1045509   ;;  %v692_v32 = vadd.f32 %v691_v28, %v690_v1  ;;  %v696_v33 = vpack.c.bf16 %v2287_v38, %v2287_v38  ;;  %v701_v10 = vpack.c.bf16 %v643_v25, %v643_v25 }
  0x60   : > { %v702_v34 = vpack.c.bf16 %v650_v26, %v650_v26  ;;  %vm767_vm5 = vcmask 1046534   ;;  %v697_v12 = vpack.c.bf16 %v615_v29, %v615_v29  ;;  %v703_v62 = vpack.c.bf16 %v657_v30, %v657_v30 }
  0x61   : > { %v704_v13 = vpack.c.bf16 %v664_v39, %v664_v39  ;;  %v705_v23 = vpack.c.bf16 %v671_v40, %v671_v40  ;;  %v698_v35 = vpack.c.bf16 %v622_v41, %v622_v41  ;;  %v706_v14 = vpack.c.bf16 %v678_v42, %v678_v42 }
  0x62   : > { %v741_v15 = vunpack.c.l.b16 %v693_v56  ;;  %v742_v24 = vunpack.c.l.b16 %v694_v61  ;;  %v699_v36 = vpack.c.bf16 %v629_v6, %v629_v6  ;;  %v700_v43 = vpack.c.bf16 %v636_v31, %v636_v31 }
  0x63   : > { %v707_v4 = vpack.c.bf16 %v685_v9, %v685_v9  ;;  %v743_v37 = vunpack.c.l.b16 %v695_v7  ;;  %v708_v16 = vpack.c.bf16 %v692_v32, %v692_v32  ;;  %v744_v17 = vunpack.c.l.b16 %v696_v33 }
  0x64   : > { %v749_v44 = vunpack.c.l.b16 %v701_v10  ;;  %v750_v45 = vunpack.c.l.b16 %v702_v34  ;;  %v745_v38 = vunpack.c.l.b16 %v697_v12  ;;  %v751_v5 = vunpack.c.l.b16 %v703_v62 }
  0x65   : > { %v752_v18 = vunpack.c.l.b16 %v704_v13  ;;  %v753_v19 = vunpack.c.l.b16 %v705_v23  ;;  %v746_v46 = vunpack.c.l.b16 %v698_v35  ;;  %v754_v47 = vunpack.c.l.b16 %v706_v14 }
  0x66   : > { %v758_v11 = vsel %vm757_vm0, %v742_v24, %v741_v15  ;;  %v771_v21 = vsel %vm757_vm0, %v750_v45, %v749_v44  ;;  %v747_v22 = vunpack.c.l.b16 %v699_v36  ;;  %v755_v48 = vunpack.c.l.b16 %v707_v4 }
  0x67   : > { %v760_v49 = vsel %vm759_vm1, %v743_v37, %v758_v11  ;;  %v772_v50 = vsel %vm759_vm1, %v751_v5, %v771_v21  ;;  %v748_v51 = vunpack.c.l.b16 %v700_v43  ;;  %v756_v52 = vunpack.c.l.b16 %v708_v16 }
  0x68   : > { %v762_v53 = vsel %vm761_vm2, %v744_v17, %v760_v49  ;;  %v773_v54 = vsel %vm761_vm2, %v752_v18, %v772_v50  ;;  %vm769_vm6 = vcmask 1047559   ;;  %vm1021_vm7 = vcmask 523264  }
  0x69   : > { %v764_v55 = vsel %vm763_vm3, %v745_v38, %v762_v53  ;;  %v774_v57 = vsel %vm763_vm3, %v753_v19, %v773_v54  ;;  %v1972_v3 = vmov 0.0  }
  0x6a   : > { %v766_v58 = vsel %vm765_vm4, %v746_v46, %v764_v55  ;;  %v775_v59 = vsel %vm765_vm4, %v754_v47, %v774_v57  ;;  %1022 = vst.msk [vmem:[#allocation3] sm:$0xff] %vm1021_vm7, %v1972_v3  ;;  %1023 = vst.msk [vmem:[#allocation3 + $0x8] sm:$0xff] %vm1021_vm7, %v1972_v3 }
  0x6b   : > { %v768_v60 = vsel %vm767_vm5, %v747_v22, %v766_v58  ;;  %v776_v63 = vsel %vm767_vm5, %v755_v48, %v775_v59 }
  0x6c   : > { %v770_v0 = vsel %vm769_vm6, %v748_v51, %v768_v60  ;;  %v777_v1 = vsel %vm769_vm6, %v756_v52, %v776_v63 }
  0x6d   : > { %v778_v2 = vpack.c.b16 %v777_v1, %v770_v0 }
  0x6f   : > { %893 = vmatmul.mubr.bf16.vlgmr.msra.gmra.mrb[0].mxu0 %v778_v2 }
 0x142   : > { %v894_v8 = vpop.f32.mrb[0].mxu0 }
 0x143   : > { %v906_v20 = vrot.slane %v894_v8, 4  ;;  %v896_v25 = vpop.f32.mrb[1].mxu0 }
 0x144   : > { %v912_v26 = vrot.slane %v896_v25, 4  ;;  %v898_v27 = vpop.f32.mrb[2].mxu0 }
 0x145   : > { %v907_v28 = vadd.f32 %v906_v20, %v894_v8  ;;  %v918_v29 = vrot.slane %v898_v27, 4  ;;  %v900_v30 = vpop.f32.mrb[3].mxu0 }
 0x146   : > { %v913_v39 = vadd.f32 %v912_v26, %v896_v25  ;;  %v924_v40 = vrot.slane %v900_v30, 4 }
 0x147   : > { %v908_v41 = vrot.slane %v907_v28, 2  ;;  %v919_v42 = vadd.f32 %v918_v29, %v898_v27 }
 0x148   : > { %v914_v56 = vrot.slane %v913_v39, 2  ;;  %v925_v61 = vadd.f32 %v924_v40, %v900_v30 }
 0x149   : > { %v909_v6 = vadd.f32 %v908_v41, %v907_v28  ;;  %v920_v31 = vrot.slane %v919_v42, 2 }
 0x14a   : > { %v915_v9 = vadd.f32 %v914_v56, %v913_v39  ;;  %v926_v7 = vrot.slane %v925_v61, 2 }
 0x14b   : > { %v910_v32 = vrot.slane %v909_v6, 1  ;;  %v921_v33 = vadd.f32 %v920_v31, %v919_v42  ;;  %v903_v42 = vld [vmem:[%s2448_s2] ss:$8 sm:$0x3] }
 0x14c   : > { %v916_v10 = vrot.slane %v915_v9, 1  ;;  %v927_v34 = vadd.f32 %v926_v7, %v925_v61  ;;  %v1671_v61 = vld [vmem:[%s2448_s2 + $0x1] ss:$8 sm:$0x3] }
 0x14d   : > { %v911_v12 = vadd.f32 %v910_v32, %v909_v6  ;;  %v922_v62 = vrot.slane %v921_v33, 1 }
 0x14e   : > { %v917_v13 = vadd.f32 %v916_v10, %v915_v9  ;;  %v928_v23 = vrot.slane %v927_v34, 1 }
 0x14f   : > { %v931_v35 = vmul.f32 0.125, %v911_v12  ;;  %v923_v14 = vadd.f32 %v922_v62, %v921_v33 }
 0x150   : > { %v932_v15 = vmul.f32 0.125, %v917_v13  ;;  %v929_v24 = vadd.f32 %v928_v23, %v927_v34 }
 0x151   : > { %v935_v36 = vsub.f32 %v894_v8, %v931_v35  ;;  %v933_v43 = vmul.f32 0.125, %v923_v14  ;;  %v984_v8 = vlaneseq }
 0x152   : > { %v936_v4 = vsub.f32 %v896_v25, %v932_v15  ;;  %v934_v37 = vmul.f32 0.125, %v929_v24 }
 0x153   : > { %v939_v16 = vmul.f32 %v935_v36, %v935_v36  ;;  %v937_v17 = vsub.f32 %v898_v27, %v933_v43  ;;  %v985_v39 = vshrl.u32 %v984_v8, 7 }
 0x154   : > { %v940_v44 = vmul.f32 %v936_v4, %v936_v4  ;;  %v938_v45 = vsub.f32 %v900_v30, %v934_v37 }
 0x155   : > { %v943_v38 = vrot.slane %v939_v16, 4  ;;  %v941_v5 = vmul.f32 %v937_v17, %v937_v17  ;;  %v986_v41 = vsub.s32 0, %v985_v39  ;;  %v990_v56 = vsub.s32 1, %v985_v39 }
 0x156   : > { %v949_v18 = vrot.slane %v940_v44, 4  ;;  %v942_v19 = vmul.f32 %v938_v45, %v938_v45 }
 0x157   : > { %v944_v46 = vadd.f32 %v943_v38, %v939_v16  ;;  %v955_v47 = vrot.slane %v941_v5, 4  ;;  %v987_v6 = vrot.slane %v903_v42, %v986_v41  ;;  %v991_v9 = vrot.slane %v903_v42, %v990_v56 }
 0x158   : > { %v950_v11 = vadd.f32 %v949_v18, %v940_v44  ;;  %v961_v21 = vrot.slane %v942_v19, 4  ;;  %v1002_v33 = vrot.slane %v1671_v61, %v986_v41  ;;  %v1006_v12 = vrot.slane %v1671_v61, %v990_v56 }
 0x159   : > { %v945_v22 = vrot.slane %v944_v46, 2  ;;  %v956_v48 = vadd.f32 %v955_v47, %v941_v5 }
 0x15a   : > { %v951_v49 = vrot.slane %v950_v11, 2  ;;  %v962_v50 = vadd.f32 %v961_v21, %v942_v19 }
 0x15b   : > { %v946_v51 = vadd.f32 %v945_v22, %v944_v46  ;;  %v957_v52 = vrot.slane %v956_v48, 2 }
 0x15c   : > { %v952_v53 = vadd.f32 %v951_v49, %v950_v11  ;;  %v963_v54 = vrot.slane %v962_v50, 2 }
 0x15d   : > { %v947_v55 = vrot.slane %v946_v51, 1  ;;  %v958_v57 = vadd.f32 %v957_v52, %v956_v48 }
 0x15e   : > { %v953_v58 = vrot.slane %v952_v53, 1  ;;  %v964_v59 = vadd.f32 %v963_v54, %v962_v50 }
 0x15f   : > { %v948_v60 = vadd.f32 %v947_v55, %v946_v51  ;;  %v959_v63 = vrot.slane %v958_v57, 1 }
 0x160   : > { %v954_v0 = vadd.f32 %v953_v58, %v952_v53  ;;  %v965_v1 = vrot.slane %v964_v59, 1 }
 0x161   : > { %v967_v2 = vmul.f32 0.125, %v948_v60  ;;  %v960_v3 = vadd.f32 %v959_v63, %v958_v57 }
 0x162   : > { %v968_v20 = vmul.f32 0.125, %v954_v0  ;;  %v966_v25 = vadd.f32 %v965_v1, %v964_v59 }
 0x163   : > { %v971_v26 = vadd.f32 1e-05, %v967_v2  ;;  %v969_v27 = vmul.f32 0.125, %v960_v3 }
 0x164   : > { %v972_v28 = vadd.f32 1e-05, %v968_v20  ;;  %v970_v29 = vmul.f32 0.125, %v966_v25 }
 0x165   : > { %1895 = vrsqrt.f32 %v971_v26  ;;  %v973_v30 = vadd.f32 1e-05, %v969_v27 }
 0x166   : > { %1897 = vrsqrt.f32 %v972_v28  ;;  %v974_v40 = vadd.f32 1e-05, %v970_v29 }
 0x167   : > { %1899 = vrsqrt.f32 %v973_v30 }
 0x168   : > { %1901 = vrsqrt.f32 %v974_v40 }
 0x16f   : > { %v1896_v31 = vpop.eup %1895 }
 0x170   : > { %v1898_v7 = vpop.eup %1897  ;;  %v979_v32 = vmul.f32 %v1896_v31, %v935_v36 }
 0x171   : > { %v1900_v10 = vpop.eup %1899  ;;  %v980_v34 = vmul.f32 %v1898_v7, %v936_v4 }
 0x172   : > { %v1902_v62 = vpop.eup %1901  ;;  %v994_v13 = vmul.f32 %v987_v6, %v979_v32  ;;  %v981_v23 = vmul.f32 %v1900_v10, %v937_v17 }
 0x173   : > { %v995_v35 = vmul.f32 %v991_v9, %v980_v34  ;;  %v982_v14 = vmul.f32 %v1902_v62, %v938_v45 }
 0x174   : > { %v1009_v15 = vadd.f32 %v1002_v33, %v994_v13  ;;  %v996_v24 = vmul.f32 %v987_v6, %v981_v23 }
 0x175   : > { %v1010_v43 = vadd.f32 %v1006_v12, %v995_v35  ;;  %v997_v37 = vmul.f32 %v991_v9, %v982_v14 }
 0x176   : > { %v1011_v16 = vadd.f32 %v1002_v33, %v996_v24  ;;  %v1013_v38 = vmax.f32 %v1009_v15, 0.0 }
 0x177   : > { %v1012_v44 = vadd.f32 %v1006_v12, %v997_v37  ;;  %v1014_v18 = vmax.f32 %v1010_v43, 0.0 }
 0x178   : > { %v1015_v5 = vmax.f32 %v1011_v16, 0.0 }
 0x179   : > { %v1016_v19 = vmax.f32 %v1012_v44, 0.0 }
 0x17a   : > { %v1017_v36 = vpack.c.bf16 %v1015_v5, %v1013_v38 }
 0x17b   : > { %v1018_v46 = vpack.c.bf16 %v1016_v19, %v1014_v18 }
 0x17c   : > { %1019 = vst [vmem:[#allocation2] sm:$0xff] %v1017_v36 }
 0x17d   : > { %1020 = vst [vmem:[#allocation2 + $0x8] sm:$0xff] %v1018_v46 }
 0x17e PF: > { %v1903_v4 = vld [vmem:[%s2144_s19 + $0x40] sm:$0xff]   ;;  %v1905_v45 = vld [vmem:[%s2144_s19 + $0x48] sm:$0xff]   ;;  %v1907_v11 = vld [vmem:[%s2144_s19 + $0x50] sm:$0xff]   ;;  %v1973_v63 = vmov 0.0   ;;  %vm1974_vm8 = vmmov 0   ;;  %vm1346_vm9 = vcmask 523264  }
 0x17f   : > { %v1904_v17 = vld [vmem:[%s2144_s19] sm:$0xff]   ;;  %1791 = vmatprep.subr.bf16.mxu0 %v1903_v4  ;;  %v1906_v47 = vld [vmem:[%s2144_s19 + $0x8] sm:$0xff]   ;;  %v1908_v21 = vld [vmem:[%s2144_s19 + $0x10] sm:$0xff]   ;;  %1822 = vmatprep.subr.bf16.mxu1 %v1973_v63  ;;  %p1696_p12 = scmp.ne.s32.totalorder %s2042_s12, 1 }
 0x180   : > { %1792 = vmatpush3.bf16.msra.mxu0 %v1904_v17  ;;  %v1909_v22 = vld [vmem:[%s2144_s19 + $0x58] sm:$0xff]   ;;  %v1911_v49 = vld [vmem:[%s2144_s19 + $0x60] sm:$0xff]   ;;  %v1913_v51 = vld [vmem:[%s2144_s19 + $0x68] sm:$0xff]   ;;  %1838 = vmatprep.mubr.msk.bf16.mxu1 %vm1974_vm8, %v1973_v63 }
 0x181   : > { %1793 = vmatprep.subr.bf16.mxu0 %v1905_v45  ;;  %v1910_v48 = vld [vmem:[%s2144_s19 + $0x18] sm:$0xff]   ;;  %v1912_v50 = vld [vmem:[%s2144_s19 + $0x20] sm:$0xff]   ;;  %v1914_v53 = vld [vmem:[%s2144_s19 + $0x28] sm:$0xff]  }
 0x182   : > { %v1915_v54 = vld [vmem:[%s2144_s19 + $0x70] sm:$0xff]   ;;  %v1917_v57 = vld [vmem:[%s2144_s19 + $0x78] sm:$0xff]   ;;  %v1919_v60 = vld [vmem:[%s2142_s18] sm:$0xff]  }
 0x183   : > { %v1916_v55 = vld [vmem:[%s2144_s19 + $0x30] sm:$0xff]   ;;  %v1918_v58 = vld [vmem:[%s2144_s19 + $0x38] sm:$0xff]   ;;  %v1024_v59 = vld [vmem:[#allocation2] sm:$0xff]  ;;  %1823 = vmatpush3.bf16.msra.mxu1 %v1919_v60  ;;  %v1975_v60 = vmov (!%p1696_p12), 0  }
 0x184   : > { %1794 = vmatpush3.bf16.msra.mxu0 %v1906_v47  ;;  %v1025_v52 = vld [vmem:[#allocation2 + $0x8] sm:$0xff]  ;;  %1824 = vmatprep.subr.bf16.mxu1 %v1973_v63  ;;  %v1921_v1 = vld [vmem:[%s2142_s18 + $0x10] sm:$0xff]   ;;  %v1922_v2 = vld [vmem:[%s2142_s18 + $0x18] sm:$0xff]  }
 0x185   : > { %1795 = vmatprep.subr.bf16.mxu0 %v1907_v11  ;;  %1186 = vmatprep.mubr.bf16.mxu0 %v1025_v52  ;;  %v1920_v0 = vld [vmem:[%s2142_s18 + $0x8] sm:$0xff]   ;;  %v1923_v3 = vld [vmem:[%s2142_s18 + $0x20] sm:$0xff]   ;;  %v1925_v20 = vld [vmem:[%s2142_s18 + $0x30] sm:$0xff]  }
 0x186   : > { %v1924_v8 = vld [vmem:[%s2142_s18 + $0x28] sm:$0xff]   ;;  %v1926_v25 = vld [vmem:[%s2142_s18 + $0x38] sm:$0xff]  }
 0x187   : > { %1825 = vmatpush3.bf16.msra.mxu1 %v1920_v0  ;;  %v1936_v0 = vld [vmem:[%s2452_s6 + $0x10] ss:$8 sps:$4 sm:$0xff] (!%p1696_p12)  }
 0x188   : > { %1796 = vmatpush3.bf16.msra.mxu0 %v1908_v21  ;;  %1826 = vmatprep.subr.bf16.mxu1 %v1973_v63 }
 0x189   : > { %1797 = vmatprep.subr.bf16.mxu0 %v1909_v22 }
 0x18b   : > { %1827 = vmatpush3.bf16.msra.mxu1 %v1921_v1  ;;  %v1937_v1 = vld [vmem:[%s2452_s6 + $0x24] ss:$8 sps:$4 sm:$0xff] (!%p1696_p12)  }
 0x18c   : > { %1798 = vmatpush3.bf16.msra.mxu0 %v1910_v48  ;;  %1828 = vmatprep.subr.bf16.mxu1 %v1973_v63 }
 0x18d   : > { %1799 = vmatprep.subr.bf16.mxu0 %v1911_v49  ;;  %v1236_v49 = vld [vmem:[#allocation3] sm:$0xff] }
 0x18f   : > { %1829 = vmatpush3.bf16.msra.mxu1 %v1922_v2 }
 0x190   : > { %1800 = vmatpush3.bf16.msra.mxu0 %v1912_v50  ;;  %1830 = vmatprep.subr.bf16.mxu1 %v1973_v63 }
 0x191   : > { %1801 = vmatprep.subr.bf16.mxu0 %v1913_v51  ;;  %v1237_v51 = vld [vmem:[#allocation3 + $0x8] sm:$0xff] }
 0x193   : > { %1831 = vmatpush3.bf16.msra.mxu1 %v1923_v3 }
 0x194   : > { %1802 = vmatpush3.bf16.msra.mxu0 %v1914_v53  ;;  %1832 = vmatprep.subr.bf16.mxu1 %v1973_v63 }
 0x195   : > { %1803 = vmatprep.subr.bf16.mxu0 %v1915_v54 }
 0x197   : > { %1833 = vmatpush3.bf16.msra.mxu1 %v1924_v8 }
 0x198   : > { %1804 = vmatpush3.bf16.msra.mxu0 %v1916_v55  ;;  %1834 = vmatprep.subr.bf16.mxu1 %v1973_v63 }
 0x199   : > { %1805 = vmatprep.subr.bf16.mxu0 %v1917_v57 }
 0x19b   : > { %1835 = vmatpush3.bf16.msra.mxu1 %v1925_v20 }
 0x19c   : > { %1806 = vmatpush3.bf16.msra.mxu0 %v1918_v58  ;;  %1836 = vmatprep.subr.bf16.mxu1 %v1973_v63  ;;  %v1931_v58 = vld [vmem:[%s2452_s6 + $0x4] ss:$8 sps:$4 sm:$0xff] (!%p1696_p12)   ;;  %v1934_v63 = vld [vmem:[%s2452_s6 + $0x14] ss:$8 sps:$4 sm:$0xff] (!%p1696_p12)  }
 0x19d   : > { %1477 = vmatprep.subr.bf16.mxu0 (!%p1696_p12), %v1931_v58 }
 0x19f   : > { %1187 = vmatmul.mubr.bf16.vlgmr.msra.gmra.mrb[0].mxu0 %v1024_v59  ;;  %1837 = vmatpush3.bf16.msra.mxu1 %v1926_v25  ;;  %v1933_v59 = vld [vmem:[%s2452_s6] ss:$8 sps:$4 sm:$0xff] (!%p1696_p12)  }
 0x1a0   : > { %1509 = vmatprep.mubr.bf16.mxu0 (!%p1696_p12), %v1975_v60  ;;  %1478 = vmatpush1.bf16.msra.mxu0 (!%p1696_p12), %v1933_v59  ;;  %v1939_v25 = vld [vmem:[%s2452_s6 + $0x20] ss:$8 sps:$4 sm:$0xff] (!%p1696_p12)  }
 0x1a1   : > { %1479 = vmatprep.subr.bf16.mxu0 (!%p1696_p12), %v1934_v63  ;;  %v1422_v59 = vld [vmem:[%s2453_s7] ss:$8 sm:$0x3] (!%p1696_p12) }
 0x1a4   : > { %1480 = vmatpush1.bf16.msra.mxu0 (!%p1696_p12), %v1936_v0 }
 0x1a5   : > { %1481 = vmatprep.subr.bf16.mxu0 (!%p1696_p12), %v1937_v1 }
 0x1a8   : > { %1482 = vmatpush1.bf16.msra.mxu0 (!%p1696_p12), %v1939_v25 }
 0x272   : > { %v1807_v26 = vpop.f32.mrb[0].mxu0 }
 0x273   : > { %v1808_v27 = vpop.f32.mrb[1].mxu0 }
 0x274   : > { %v1809_v28 = vadd.f32 %v1808_v27, %v1807_v26  ;;  %v1810_v29 = vpop.f32.mrb[2].mxu0 }
 0x275   : > { %v1811_v30 = vpop.f32.mrb[3].mxu0 }
 0x276   : > { %v1195_v39 = vrot.slane %v1809_v28, 4  ;;  %v1812_v40 = vadd.f32 %v1811_v30, %v1810_v29 }
 0x278   : > { %v1196_v41 = vadd.f32 %v1809_v28, %v1195_v39  ;;  %v1201_v42 = vrot.slane %v1812_v40, 4  ;;  %v1942_v39 = vld [vmem:[%s2452_s6 + $0x30] ss:$8 sps:$4 sm:$0xff] (!%p1696_p12)  }
 0x27a   : > { %v1197_v56 = vrot.slane %v1196_v41, 2  ;;  %v1202_v61 = vadd.f32 %v1812_v40, %v1201_v42 }
 0x27c   : > { %v1198_v6 = vadd.f32 %v1197_v56, %v1196_v41  ;;  %v1203_v31 = vrot.slane %v1202_v61, 2 }
 0x27e   : > { %v1199_v9 = vrot.slane %v1198_v6, 1  ;;  %v1204_v7 = vadd.f32 %v1203_v31, %v1202_v61 }
 0x280   : > { %v1200_v32 = vadd.f32 %v1199_v9, %v1198_v6  ;;  %v1205_v33 = vrot.slane %v1204_v7, 1 }
 0x282   : > { %v1208_v10 = vmul.f32 0.125, %v1200_v32  ;;  %v1206_v34 = vadd.f32 %v1205_v33, %v1204_v7 }
 0x284   : > { %v1210_v12 = vsub.f32 %v1809_v28, %v1208_v10  ;;  %v1209_v62 = vmul.f32 0.125, %v1206_v34  ;;  %v1940_v28 = vld [vmem:[%s2452_s6 + $0x34] ss:$8 sps:$4 sm:$0xff] (!%p1696_p12)  }
 0x285   : > { %1483 = vmatprep.subr.bf16.mxu0 (!%p1696_p12), %v1940_v28 }
 0x286   : > { %v1212_v13 = vmul.f32 %v1210_v12, %v1210_v12  ;;  %v1211_v23 = vsub.f32 %v1812_v40, %v1209_v62  ;;  %1484 = vmatpush1.bf16.msra.mxu0 (!%p1696_p12), %v1942_v39 }
 0x288   : > { %v1214_v35 = vrot.slane %v1212_v13, 4  ;;  %v1213_v14 = vmul.f32 %v1211_v23, %v1211_v23 }
 0x28a   : > { %v1215_v15 = vadd.f32 %v1214_v35, %v1212_v13  ;;  %v1220_v24 = vrot.slane %v1213_v14, 4 }
 0x28c   : > { %v1216_v43 = vrot.slane %v1215_v15, 2  ;;  %v1221_v37 = vadd.f32 %v1220_v24, %v1213_v14 }
 0x28e   : > { %v1217_v16 = vadd.f32 %v1216_v43, %v1215_v15  ;;  %v1222_v44 = vrot.slane %v1221_v37, 2 }
 0x290   : > { %v1218_v38 = vrot.slane %v1217_v16, 1  ;;  %v1223_v5 = vadd.f32 %v1222_v44, %v1221_v37 }
 0x292   : > { %v1219_v18 = vadd.f32 %v1218_v38, %v1217_v16  ;;  %v1224_v19 = vrot.slane %v1223_v5, 1 }
 0x294   : > { %v1226_v36 = vmul.f32 0.125, %v1219_v18  ;;  %v1225_v46 = vadd.f32 %v1224_v19, %v1223_v5 }
 0x296   : > { %v1228_v4 = vadd.f32 1e-05, %v1226_v36  ;;  %v1227_v17 = vmul.f32 0.125, %v1225_v46 }
 0x298   : > { %1927 = vrsqrt.f32 %v1228_v4  ;;  %v1229_v45 = vadd.f32 1e-05, %v1227_v17 }
 0x29a   : > { %1929 = vrsqrt.f32 %v1229_v45  ;;  %v1697_v45 = vld [vmem:[%s2451_s5] ss:$0 sm:$0xff] (!%p1696_p12) }
 0x2a2   : > { %v1928_v47 = vpop.eup %1927 }
 0x2a3   : > { %v1232_v11 = vmul.f32 %v1928_v47, %v1210_v12 }
 0x2a4   : > { %v1930_v21 = vpop.eup %1929 }
 0x2a5   : > { %v1233_v22 = vmul.f32 %v1930_v21, %v1211_v23  ;;  %1234 = vst [vmem:[%s2146_s20] sm:$0xff] %v1232_v11  ;;  %v1698_v21 = vld [vmem:[%s2451_s5 + $0x1] ss:$0 sm:$0xff] (!%p1696_p12) }
 0x2a7   : > { %1235 = vst [vmem:[%s2146_s20 + $0x8] sm:$0xff] %v1233_v22  ;;  %v1238_v48 = vpack.c.bf16 %v1233_v22, %v1232_v11 }
 0x2a9   : > { %1839 = vmatmul.mubr.bf16.vlgmr.msra.gmra.mrb[0].mxu1 %v1238_v48 }
 0x37b   : > { %1352 = sbr.rel (%p1696_p12) target bundleno = 1180 (0x49c), region = 101 }
 0x37c   : > { %v1337_v50 = vpop.f32.mrb[0].mxu1 }
 0x37d   : > { %v1344_v52 = vadd.f32 %v1337_v50, %v1236_v49  ;;  %v1840_v53 = vpop.f32.mrb[1].mxu1 }
 0x37e   : > { %v1340_v54 = vpop.f32.mrb[2].mxu1 }
 0x37f   : > { %1347 = vst.msk [vmem:[#allocation3] sm:$0xff] %vm1346_vm9, %v1344_v52  ;;  %v1345_v55 = vadd.f32 %v1340_v54, %v1237_v51  ;;  %v1841_v57 = vpop.f32.mrb[3].mxu1 }
 0x381   : > { %1348 = vst.msk [vmem:[#allocation3 + $0x8] sm:$0xff] %vm1346_vm9, %v1345_v55  ;;  %v1424_v55 = vlaneseq (!%p1696_p12) }
 0x383   : > { %v1425_v57 = vshrl.u32 %v1424_v55, 7 }
 0x385   : > { %v1426_v58 = vsub.s32 0, %v1425_v57  ;;  %v1430_v60 = vsub.s32 1, %v1425_v57 }
 0x386   : > { %v1353_v2 = vld [vmem:[#allocation3] sm:$0xff] }
 0x387   : > { %v1357_v8 = vsel %vm1346_vm9, %v1353_v2, 0.0  ;;  %v1427_v63 = vrot.slane %v1422_v59, %v1426_v58  ;;  %v1431_v0 = vrot.slane %v1422_v59, %v1430_v60 }
 0x388   : > { %v1354_v3 = vld [vmem:[#allocation3 + $0x8] sm:$0xff]  ;;  %v1358_v26 = vrot.slane %v1357_v8, 4 }
 0x389   : > { %v1364_v20 = vsel %vm1346_vm9, %v1354_v3, 0.0 }
 0x38a   : > { %v1365_v27 = vrot.slane %v1364_v20, 4  ;;  %v1359_v29 = vadd.f32 %v1358_v26, %v1357_v8 }
 0x38c   : > { %v1366_v30 = vadd.f32 %v1365_v27, %v1364_v20  ;;  %v1360_v40 = vrot.slane %v1359_v29, 2 }
 0x38e   : > { %v1367_v41 = vrot.slane %v1366_v30, 2  ;;  %v1361_v42 = vadd.f32 %v1360_v40, %v1359_v29 }
 0x390   : > { %v1368_v56 = vadd.f32 %v1367_v41, %v1366_v30  ;;  %v1362_v61 = vrot.slane %v1361_v42, 1 }
 0x392   : > { %v1369_v6 = vrot.slane %v1368_v56, 1  ;;  %v1363_v31 = vadd.f32 %v1362_v61, %v1361_v42 }
 0x394   : > { %v1370_v9 = vadd.f32 %v1369_v6, %v1368_v56  ;;  %v1371_v7 = vmul.f32 0.125, %v1363_v31 }
 0x396   : > { %v1372_v32 = vmul.f32 0.125, %v1370_v9  ;;  %v1373_v33 = vsub.f32 %v1353_v2, %v1371_v7 }
 0x398   : > { %v1374_v10 = vsub.f32 %v1354_v3, %v1372_v32  ;;  %v1375_v34 = vmul.f32 %v1373_v33, %v1373_v33 }
 0x39a   : > { %v1376_v12 = vmul.f32 %v1374_v10, %v1374_v10  ;;  %v1377_v62 = vsel %vm1346_vm9, %v1375_v34, 0.0 }
 0x39b   : > { %v1378_v23 = vrot.slane %v1377_v62, 4 }
 0x39c   : > { %v1384_v13 = vsel %vm1346_vm9, %v1376_v12, 0.0 }
 0x39d   : > { %v1385_v35 = vrot.slane %v1384_v13, 4  ;;  %v1379_v14 = vadd.f32 %v1378_v23, %v1377_v62 }
 0x39f   : > { %v1386_v15 = vadd.f32 %v1385_v35, %v1384_v13  ;;  %v1380_v24 = vrot.slane %v1379_v14, 2 }
 0x3a1   : > { %v1387_v43 = vrot.slane %v1386_v15, 2  ;;  %v1381_v37 = vadd.f32 %v1380_v24, %v1379_v14 }
 0x3a3   : > { %v1388_v16 = vadd.f32 %v1387_v43, %v1386_v15  ;;  %v1382_v44 = vrot.slane %v1381_v37, 1 }
 0x3a5   : > { %v1389_v38 = vrot.slane %v1388_v16, 1  ;;  %v1383_v5 = vadd.f32 %v1382_v44, %v1381_v37 }
 0x3a7   : > { %v1390_v18 = vadd.f32 %v1389_v38, %v1388_v16  ;;  %v1391_v19 = vmul.f32 0.125, %v1383_v5 }
 0x3a9   : > { %v1392_v36 = vmul.f32 0.125, %v1390_v18  ;;  %v1393_v46 = vadd.f32 1e-05, %v1391_v19 }
 0x3ab   : > { %v1394_v4 = vadd.f32 1e-05, %v1392_v36  ;;  %1943 = vrsqrt.f32 %v1393_v46 }
 0x3ad   : > { %1945 = vrsqrt.f32 %v1394_v4 }
 0x3b5   : > { %v1944_v17 = vpop.eup %1943 }
 0x3b6   : > { %v1397_v11 = vmul.f32 %v1944_v17, %v1373_v33 }
 0x3b7   : > { %v1946_v47 = vpop.eup %1945 }
 0x3b8   : > { %v1398_v22 = vmul.f32 %v1946_v47, %v1374_v10  ;;  %v1403_v48 = vmul.f32 %v1697_v45, %v1397_v11 }
 0x3ba   : > { %v1404_v49 = vmul.f32 %v1697_v45, %v1398_v22  ;;  %v1409_v50 = vadd.f32 %v1698_v21, %v1403_v48 }
 0x3bc   : > { %v1410_v51 = vadd.f32 %v1698_v21, %v1404_v49  ;;  %v1411_v52 = vmax.f32 %v1409_v50, 0.0 }
 0x3be   : > { %v1412_v53 = vmax.f32 %v1410_v51, 0.0 }
 0x3c0   : > { %v1413_v54 = vpack.c.bf16 %v1412_v53, %v1411_v52 }
 0x3c2   : > { %1707 = vmatmul.mubr.msk.bf16.vlgmr.msra.gmra.mrb[0].mxu0 %vm1346_vm9, %v1413_v54 }
 0x495   : > { %v1511_v1 = vpop.f32.mrb[0].mxu0 }
 0x496   : > { %v1512_v2 = vadd.f32 %v1511_v1, %v1427_v63  ;;  %v1513_v3 = vpop.f32.mrb[1].mxu0 }
 0x497   : > { %v1514_v8 = vadd.f32 %v1513_v3, %v1431_v0  ;;  %v1515_v20 = vpop.f32.mrb[2].mxu0 }
 0x498   : > { %1520 = vst [vmem:[%s2455_s9] sm:$0xff] %v1512_v2  ;;  %v1516_v25 = vadd.f32 %v1515_v20, %v1427_v63  ;;  %v1517_v26 = vpop.f32.mrb[3].mxu0 }
 0x499   : > { %1521 = vst [vmem:[%s2455_s9 + $0x8] sm:$0xff] %v1514_v8  ;;  %v1518_v27 = vadd.f32 %v1517_v26, %v1431_v0 }
 0x49a   : > { %1522 = vst [vmem:[%s2455_s9 + $0x10] sm:$0xff] %v1516_v25 }
 0x49b   : > { %1523 = vst [vmem:[%s2455_s9 + $0x18] sm:$0xff] %v1518_v27 }
 0x49c PF: > { %1530 = sbr.rel (!%p2057_p5) target bundleno = 1187 (0x4a3), region = 105  ;;  %s1709_s18 = sshll.u32 (%p2057_p5), %s2042_s12, 3  ;;  %v1562_v28 = vld [vmem:[%s2146_s20] sm:$0xff] (%p2057_p5)  ;;  %v1564_v29 = vld [vmem:[%s2146_s20 + $0x8] sm:$0xff] (%p2057_p5) }
 0x49d   : > { %s1532_s23 = scalar_lea.vmem (%p2057_p5), %s2454_s8, %s1709_s18 }
 0x49e   : > { %1563 = vst [vmem:[%s1532_s23] sm:$0xff] (%p2057_p5), %v1562_v28  ;;  %1565 = vst [vmem:[%s1532_s23 + $0x10] sm:$0xff] (%p2057_p5), %v1564_v29 }
 0x4a3 PF: > { %p17_p13 = scmp.ge.s32.totalorder %s2045_s13, 4   ;;  %s2457_s30 = smov %s1965_s10 }
 0x4a4   : > { %s2458_s10 = smov %s2055_s16  ;;  %s2459_s11 = smov %s2045_s13 }
 0x4a5   :  { %19 = sbr.rel (!%p17_p13) target bundleno = 2 (0x2), region = 186 }

</bundles_post_ra>
